<compile_context>
chip_gen: v7x
topology: tpu7x:2x2x1
jax: 0.10.0
libtpu: 0.0.40
codegen_flags: <defaults>
</compile_context>

<pallas_src>
import math

import jax
import jax.numpy as jnp
from jax.experimental import pallas as pl
from jax.experimental.pallas import tpu as pltpu

M_MARGIN = 4  # self.m in the torch module (default)

# cos(m*theta) as a polynomial in cos(theta) -- same as self.mlambda in torch.
_MLAMBDA = [
    lambda x: x * 0.0 + 1.0,
    lambda x: x,
    lambda x: 2.0 * x * x - 1.0,
    lambda x: 4.0 * x * x * x - 3.0 * x,
    lambda x: 8.0 * x ** 4 - 8.0 * x * x + 1.0,
    lambda x: 16.0 * x ** 5 - 20.0 * x ** 3 + 5.0 * x,
]

# Exact reciprocal by default: pl.reciprocal(..., approx=True) routes to the
# EUP slot but may exceed the 1e-4-ish test tolerance.
_APPROX_RECIPROCAL = False


def _round_up(n, m):
    return (n + m - 1) // m * m


def _angle_linear_kernel(x_ref, w_ref, factor_ref, wlen_ref,
                         cos_out_ref, phi_out_ref):
    x = x_ref[...]            # (tB, D)  float32
    w = w_ref[...]            # (D, tF)  float32 (raw weight; renorm factor folded below)
    factor = factor_ref[...]  # (1, tF)  column renorm factor (includes *1e5)
    wlen = wlen_ref[...]      # (1, tF)  = ||w * factor||_2 per column

    # per-row L2 norm of x
    xlen = jnp.sqrt(jnp.sum(x * x, axis=1, keepdims=True))               # (tB, 1)

    # MXU matmul on the raw weight; the column renorm factor is applied to the
    # (tB, tF) result instead of the (D, tF) weight tile (same math, fewer ops).
    raw = jnp.dot(x, w, preferred_element_type=jnp.float32)              # (tB, tF)

    denom = jnp.maximum(xlen * wlen, 1e-8)                               # (tB, tF)
    scale = factor * pl.reciprocal(denom, approx=_APPROX_RECIPROCAL)     # (tB, tF)
    cos_theta = jnp.clip(raw * scale, -1.0, 1.0)

    # cos(m * theta)
    cos_m_theta = _MLAMBDA[M_MARGIN](cos_theta)

    # k = floor(m * acos(cos_theta) / pi).  For theta in [0, pi]:
    #   k >= j  <=>  theta >= j*pi/m  <=>  cos_theta <= cos(j*pi/m)
    # Thresholds are Python floats (compile-time constants -- no traced float()).
    k = jnp.zeros_like(cos_theta)
    for j in range(1, M_MARGIN + 1):
        thr = math.cos(math.pi * j / M_MARGIN)
        k = k + (cos_theta <= thr).astype(jnp.float32)

    # phi_theta = (-1)^k * cos_m_theta - 2k   (k is a non-negative integer-valued f32)
    sign = 1.0 - 2.0 * jnp.mod(k, 2.0)
    phi_theta = sign * cos_m_theta - 2.0 * k

    cos_out_ref[...] = cos_theta * xlen
    phi_out_ref[...] = phi_theta * xlen


def angle_linear(x, weight):
    """x: (B, D) float32; weight: (D, F) float32 -> (cos_theta, phi_theta), each (B, F)."""
    B, D = x.shape
    D2, F = weight.shape
    assert D == D2

    x = x.astype(jnp.float32)
    weight = weight.astype(jnp.float32)

    # ---- hoisted column renorm: one (D, F) reduction computed ONCE (not per B tile)
    wnorm = jnp.sqrt(jnp.sum(weight * weight, axis=0, keepdims=True))        # (1, F)
    factor = jnp.where(wnorm > 1e-5, 1e-5 / (wnorm + 1e-7), 1.0) * 1e5       # (1, F)
    wlen = wnorm * factor            # == ||weight * factor||_2 per column    # (1, F)

    # ---- tiling: lane-dense F tiles (mult. of 128), sublane-aligned B tiles (mult. of 8)
    tB = min(_round_up(B, 8), 128)
    tF = min(_round_up(F, 128), 512)
    B_pad = _round_up(B, tB)
    F_pad = _round_up(F, tF)

    x_p = jnp.pad(x, ((0, B_pad - B), (0, 0)))
    w_p = jnp.pad(weight, ((0, 0), (0, F_pad - F)))
    factor_p = jnp.pad(factor, ((0, 0), (0, F_pad - F)))
    wlen_p = jnp.pad(wlen, ((0, 0), (0, F_pad - F)))

    # F outer, B inner: the (D, tF) weight block index is constant across the
    # inner B axis, so Pallas does not re-issue the weight DMA per B tile.
    grid = (F_pad // tF, B_pad // tB)

    flops = 2 * B_pad * D * F_pad
    bytes_accessed = 4 * (B_pad * D + D * F_pad + 2 * F_pad + 2 * B_pad * F_pad)

    out_shape = (
        jax.ShapeDtypeStruct((B_pad, F_pad), jnp.float32),
        jax.ShapeDtypeStruct((B_pad, F_pad), jnp.float32),
    )

    cos_p, phi_p = pl.pallas_call(
        _angle_linear_kernel,
        out_shape=out_shape,
        grid_spec=pltpu.PrefetchScalarGridSpec(
            num_scalar_prefetch=0,
            grid=grid,
            in_specs=[
                pl.BlockSpec((tB, D), lambda f, b: (b, 0)),   # x: indexed by B only
                pl.BlockSpec((D, tF), lambda f, b: (0, f)),   # weight: indexed by F only
                pl.BlockSpec((1, tF), lambda f, b: (0, f)),   # factor
                pl.BlockSpec((1, tF), lambda f, b: (0, f)),   # wlen
            ],
            out_specs=(
                pl.BlockSpec((tB, tF), lambda f, b: (b, f)),
                pl.BlockSpec((tB, tF), lambda f, b: (b, f)),
            ),
        ),
        compiler_params=pltpu.CompilerParams(
            dimension_semantics=("parallel", "parallel"),
            vmem_limit_bytes=48 * 1024 * 1024,
        ),
        cost_estimate=pl.CostEstimate(
            flops=flops, transcendentals=0, bytes_accessed=bytes_accessed),
    )(x_p, w_p, factor_p, wlen_p)

    return cos_p[:B, :F], phi_p[:B, :F]


def _renorm_cols(w, maxnorm=1e-5):
    """torch.Tensor.renorm_(p=2, dim=1, maxnorm) for a (D, F) matrix: per-column renorm."""
    norms = jnp.sqrt(jnp.sum(w * w, axis=0, keepdims=True))
    factor = jnp.where(norms > maxnorm, maxnorm / (norms + 1e-7), 1.0)
    return w * factor


def _reference(x, weight):
    """Pure-JAX, torch-faithful reference (uses arccos) for sanity checking."""
    wnorm = jnp.sqrt(jnp.sum(weight * weight, axis=0, keepdims=True))
    ww = weight * jnp.where(wnorm > 1e-5, 1e-5 / (wnorm + 1e-7), 1.0) * 1e5
    xlen = jnp.sqrt(jnp.sum(x * x, axis=1, keepdims=True))
    wlen = jnp.sqrt(jnp.sum(ww * ww, axis=0, keepdims=True))
    cos_theta = jnp.clip(x @ ww / jnp.maximum(xlen * wlen, 1e-8), -1.0, 1.0)
    cos_m_theta = _MLAMBDA[M_MARGIN](cos_theta)
    theta = jnp.arccos(cos_theta)
    k = jnp.floor(M_MARGIN * theta / 3.14159265)
    phi_theta = (1.0 - 2.0 * jnp.mod(k, 2.0)) * cos_m_theta - 2.0 * k
    return cos_theta * xlen, phi_theta * xlen


if __name__ == "__main__":
    B, IN, OUT = 8, 32, 128

    key = jax.random.PRNGKey(0)
    kx, kw = jax.random.split(key)

    # Deterministic parameter init, mirroring:
    #   weight.data.uniform_(-1, 1).renorm_(2, 1, 1e-05).mul_(100000.0)
    w0 = jax.random.uniform(kw, (IN, OUT), dtype=jnp.float32, minval=-1.0, maxval=1.0)
    weight = _renorm_cols(w0) * 1e5

    x = jax.random.normal(kx, (B, IN), dtype=jnp.float32)

    cos_t, phi_t = angle_linear(x, weight)
    jax.block_until_ready((cos_t, phi_t))

    cos_ref, phi_ref = _reference(x, weight)
    assert cos_t.shape == (B, OUT) and phi_t.shape == (B, OUT)
    assert jnp.allclose(cos_t, cos_ref, atol=5e-4, rtol=5e-4)
    assert jnp.allclose(phi_t, phi_ref, atol=5e-4, rtol=5e-4)

    print("KERNEL_OK")
</pallas_src>

<mosaic_0001>
module attributes {stable_mosaic.version = 11 : i64} {
  func.func @_angle_linear_kernel(%arg0: i32, %arg1: i32, %arg2: memref<8x32xf32, #tpu.memory_space<vmem>>, %arg3: memref<32x128xf32, #tpu.memory_space<vmem>>, %arg4: memref<1x128xf32, #tpu.memory_space<vmem>>, %arg5: memref<1x128xf32, #tpu.memory_space<vmem>>, %arg6: memref<8x128xf32, #tpu.memory_space<vmem>>, %arg7: memref<8x128xf32, #tpu.memory_space<vmem>>) attributes {dimension_semantics = [#tpu.dimension_semantics<parallel>, #tpu.dimension_semantics<parallel>], iteration_bounds = array<i64: 1, 1>, scalar_prefetch = 0 : i64, scratch_operands = 0 : i64, tpu.core_type = #tpu.core_type<tc>, window_params = [{transform_indices = @transform_0, window_bounds = array<i64: 8, 32>}, {transform_indices = @transform_1, window_bounds = array<i64: 32, 128>}, {transform_indices = @transform_2, window_bounds = array<i64: 1, 128>}, {transform_indices = @transform_3, window_bounds = array<i64: 1, 128>}, {transform_indices = @transform_4, window_bounds = array<i64: 8, 128>}, {transform_indices = @transform_5, window_bounds = array<i64: 8, 128>}]} {
    %c0 = arith.constant 0 : index
    %c0_0 = arith.constant 0 : index
    %0 = vector.load %arg2[%c0, %c0_0] : memref<8x32xf32, #tpu.memory_space<vmem>>, vector<8x32xf32>
    %c0_1 = arith.constant 0 : index
    %c0_2 = arith.constant 0 : index
    %1 = vector.load %arg3[%c0_1, %c0_2] : memref<32x128xf32, #tpu.memory_space<vmem>>, vector<32x128xf32>
    %c0_3 = arith.constant 0 : index
    %c0_4 = arith.constant 0 : index
    %2 = vector.load %arg4[%c0_3, %c0_4] : memref<1x128xf32, #tpu.memory_space<vmem>>, vector<1x128xf32>
    %c0_5 = arith.constant 0 : index
    %c0_6 = arith.constant 0 : index
    %3 = vector.load %arg5[%c0_5, %c0_6] : memref<1x128xf32, #tpu.memory_space<vmem>>, vector<1x128xf32>
    %4 = arith.mulf %0, %0 : vector<8x32xf32>
    %cst = arith.constant dense<0.000000e+00> : vector<8xf32>
    %5 = vector.multi_reduction <add>, %4, %cst [1] : vector<8x32xf32> to vector<8xf32>
    %6 = vector.shape_cast %5 : vector<8xf32> to vector<8x1xf32>
    %7 = math.sqrt %6 : vector<8x1xf32>
    %cst_7 = arith.constant dense<0.000000e+00> : vector<8x128xf32>
    %8 = tpu.matmul %0, %1, %cst_7 {dimension_numbers = #tpu.dot_dimension_numbers<[1], [0], [0], [1], [0, 0, 1, 1], [], []>} : vector<8x32xf32>, vector<32x128xf32>, vector<8x128xf32> -> vector<8x128xf32>
    %9 = vector.broadcast %7 : vector<8x1xf32> to vector<8x128xf32>
    %10 = vector.broadcast %3 : vector<1x128xf32> to vector<8x128xf32>
    %11 = arith.mulf %9, %10 : vector<8x128xf32>
    %cst_8 = arith.constant 9.99999993E-9 : f32
    %12 = vector.broadcast %cst_8 : f32 to vector<8x128xf32>
    %13 = arith.maximumf %11, %12 : vector<8x128xf32>
    %14 = tpu.reciprocal %13 : vector<8x128xf32> -> vector<8x128xf32>
    %15 = vector.broadcast %2 : vector<1x128xf32> to vector<8x128xf32>
    %16 = arith.mulf %15, %14 : vector<8x128xf32>
    %17 = arith.mulf %8, %16 : vector<8x128xf32>
    %cst_9 = arith.constant -1.000000e+00 : f32
    %cst_10 = arith.constant 1.000000e+00 : f32
    %18 = vector.broadcast %cst_9 : f32 to vector<8x128xf32>
    %19 = arith.maximumf %18, %17 : vector<8x128xf32>
    %20 = vector.broadcast %cst_10 : f32 to vector<8x128xf32>
    %21 = arith.minimumf %20, %19 : vector<8x128xf32>
    %22 = arith.mulf %21, %21 : vector<8x128xf32>
    %23 = arith.mulf %22, %22 : vector<8x128xf32>
    %cst_11 = arith.constant 8.000000e+00 : f32
    %24 = vector.broadcast %cst_11 : f32 to vector<8x128xf32>
    %25 = arith.mulf %24, %23 : vector<8x128xf32>
    %cst_12 = arith.constant 8.000000e+00 : f32
    %26 = vector.broadcast %cst_12 : f32 to vector<8x128xf32>
    %27 = arith.mulf %26, %21 : vector<8x128xf32>
    %28 = arith.mulf %27, %21 : vector<8x128xf32>
    %29 = arith.subf %25, %28 : vector<8x128xf32>
    %cst_13 = arith.constant 1.000000e+00 : f32
    %30 = vector.broadcast %cst_13 : f32 to vector<8x128xf32>
    %31 = arith.addf %29, %30 : vector<8x128xf32>
    %cst_14 = arith.constant 0.000000e+00 : f32
    %32 = vector.broadcast %cst_14 : f32 to vector<8x128xf32>
    %cst_15 = arith.constant 0.707106769 : f32
    %33 = vector.broadcast %cst_15 : f32 to vector<8x128xf32>
    %34 = arith.cmpf ole, %21, %33 : vector<8x128xf32>
    %35 = arith.extui %34 : vector<8x128xi1> to vector<8x128xi32>
    %36 = arith.sitofp %35 : vector<8x128xi32> to vector<8x128xf32>
    %37 = arith.addf %32, %36 : vector<8x128xf32>
    %cst_16 = arith.constant 6.12323426E-17 : f32
    %38 = vector.broadcast %cst_16 : f32 to vector<8x128xf32>
    %39 = arith.cmpf ole, %21, %38 : vector<8x128xf32>
    %40 = arith.extui %39 : vector<8x128xi1> to vector<8x128xi32>
    %41 = arith.sitofp %40 : vector<8x128xi32> to vector<8x128xf32>
    %42 = arith.addf %37, %41 : vector<8x128xf32>
    %cst_17 = arith.constant -0.707106769 : f32
    %43 = vector.broadcast %cst_17 : f32 to vector<8x128xf32>
    %44 = arith.cmpf ole, %21, %43 : vector<8x128xf32>
    %45 = arith.extui %44 : vector<8x128xi1> to vector<8x128xi32>
    %46 = arith.sitofp %45 : vector<8x128xi32> to vector<8x128xf32>
    %47 = arith.addf %42, %46 : vector<8x128xf32>
    %cst_18 = arith.constant -1.000000e+00 : f32
    %48 = vector.broadcast %cst_18 : f32 to vector<8x128xf32>
    %49 = arith.cmpf ole, %21, %48 : vector<8x128xf32>
    %50 = arith.extui %49 : vector<8x128xi1> to vector<8x128xi32>
    %51 = arith.sitofp %50 : vector<8x128xi32> to vector<8x128xf32>
    %52 = arith.addf %47, %51 : vector<8x128xf32>
    %cst_19 = arith.constant 2.000000e+00 : f32
    %53 = vector.broadcast %cst_19 : f32 to vector<8x128xf32>
    %54 = arith.remf %52, %53 : vector<8x128xf32>
    %cst_20 = arith.constant 0.000000e+00 : f32
    %55 = vector.broadcast %cst_20 : f32 to vector<8x128xf32>
    %56 = arith.cmpf one, %54, %55 : vector<8x128xf32>
    %cst_21 = arith.constant 0.000000e+00 : f32
    %57 = vector.broadcast %cst_21 : f32 to vector<8x128xf32>
    %58 = arith.cmpf olt, %54, %57 : vector<8x128xf32>
    %cst_22 = arith.constant 0.000000e+00 : f32
    %59 = arith.cmpf olt, %cst_19, %cst_22 : f32
    %60 = vector.broadcast %59 : i1 to vector<8x128xi1>
    %61 = vector.broadcast %60 : vector<8x128xi1> to vector<8x128xi1>
    %62 = arith.xori %58, %61 : vector<8x128xi1>
    %63 = arith.andi %62, %56 : vector<8x128xi1>
    %64 = vector.broadcast %cst_19 : f32 to vector<8x128xf32>
    %65 = arith.addf %54, %64 : vector<8x128xf32>
    %66 = arith.select %63, %65, %54 : vector<8x128xi1>, vector<8x128xf32>
    %cst_23 = arith.constant 2.000000e+00 : f32
    %67 = vector.broadcast %cst_23 : f32 to vector<8x128xf32>
    %68 = arith.mulf %67, %66 : vector<8x128xf32>
    %cst_24 = arith.constant 1.000000e+00 : f32
    %69 = vector.broadcast %cst_24 : f32 to vector<8x128xf32>
    %70 = arith.subf %69, %68 : vector<8x128xf32>
    %71 = arith.mulf %70, %31 : vector<8x128xf32>
    %cst_25 = arith.constant 2.000000e+00 : f32
    %72 = vector.broadcast %cst_25 : f32 to vector<8x128xf32>
    %73 = arith.mulf %72, %52 : vector<8x128xf32>
    %74 = arith.subf %71, %73 : vector<8x128xf32>
    %75 = vector.broadcast %7 : vector<8x1xf32> to vector<8x128xf32>
    %76 = arith.mulf %21, %75 : vector<8x128xf32>
    %c0_26 = arith.constant 0 : index
    %c0_27 = arith.constant 0 : index
    %77 = vector.load %arg6[%c0_26, %c0_27] : memref<8x128xf32, #tpu.memory_space<vmem>>, vector<8x128xf32>
    tpu.vector_store %arg6[%c0_26, %c0_27], %76 {strides = array<i32>} : memref<8x128xf32, #tpu.memory_space<vmem>>, vector<8x128xf32>,
    %78 = vector.broadcast %7 : vector<8x1xf32> to vector<8x128xf32>
    %79 = arith.mulf %74, %78 : vector<8x128xf32>
    %c0_28 = arith.constant 0 : index
    %c0_29 = arith.constant 0 : index
    %80 = vector.load %arg7[%c0_28, %c0_29] : memref<8x128xf32, #tpu.memory_space<vmem>>, vector<8x128xf32>
    tpu.vector_store %arg7[%c0_28, %c0_29], %79 {strides = array<i32>} : memref<8x128xf32, #tpu.memory_space<vmem>>, vector<8x128xf32>,
    return
  }
  func.func @transform_0(%arg0: i32, %arg1: i32) -> (i32, i32) {
    %c0_i32 = arith.constant 0 : i32
    %c0_i32_0 = arith.constant 0 : i32
    return %arg1, %c0_i32 : i32, i32
  }
  func.func @transform_1(%arg0: i32, %arg1: i32) -> (i32, i32) {
    %c0_i32 = arith.constant 0 : i32
    %c0_i32_0 = arith.constant 0 : i32
    return %c0_i32, %arg0 : i32, i32
  }
  func.func @transform_2(%arg0: i32, %arg1: i32) -> (i32, i32) {
    %c0_i32 = arith.constant 0 : i32
    %c0_i32_0 = arith.constant 0 : i32
    return %c0_i32, %arg0 : i32, i32
  }
  func.func @transform_3(%arg0: i32, %arg1: i32) -> (i32, i32) {
    %c0_i32 = arith.constant 0 : i32
    %c0_i32_0 = arith.constant 0 : i32
    return %c0_i32, %arg0 : i32, i32
  }
  func.func @transform_4(%arg0: i32, %arg1: i32) -> (i32, i32) {
    %c0_i32 = arith.constant 0 : i32
    return %arg1, %arg0 : i32, i32
  }
  func.func @transform_5(%arg0: i32, %arg1: i32) -> (i32, i32) {
    %c0_i32 = arith.constant 0 : i32
    return %arg1, %arg0 : i32, i32
  }
}

</mosaic_0001>

<bundles_post_ra>
// kernel: tpu_custom_call.1
= control target key start
LH: loop header
LB: loop body
LE: loop exit
PB: predicated region body
PF: predicated region fallthrough
CT: control target
= control target key end

     0   :  { %11 = vsyncpa [#allocation3], 0  ;;  %s486_s0 = inlined_call_operand.hbm [shape: f32[8,32], index: 0, kind: input, shape index: {}]   ;;  %s487_s1 = inlined_call_operand.hbm [shape: f32[32,128], index: 1, kind: input, shape index: {}]   ;;  %s488_s2 = inlined_call_operand.vmem [shape: f32[1,128], index: 2, kind: input, shape index: {}]   ;;  %s489_s3 = inlined_call_operand.vmem [shape: f32[1,128], index: 3, kind: input, shape index: {}]   ;;  %s490_s4 = inlined_call_operand.hbm [shape: f32[8,128], index: 4, kind: output, shape index: {0}]   ;;  %s491_s5 = inlined_call_operand.hbm [shape: f32[8,128], index: 5, kind: output, shape index: {1}]  }
   0x1   :  { %12 = vsyncpa [#allocation6], 0 }
   0x2   :  { %13 = vsyncpa [#allocation4], 0 }
   0x3   :  { %14 = vsyncpa [#allocation9], 0  ;;  %s375_s18 = smov [#allocation2]   ;;  %s376_s20 = smov [#allocation5]  }
   0x4   :  { %s21_s19 = sshll.u32 %s375_s18, 4  ;;  %s30_s21 = sshll.u32 %s376_s20, 4  ;;  %s22_s19 = int_to_ptr.vmem [resolvable:$true] %s21_s19  ;;  %s414_s21 = int_to_ptr.vmem [resolvable:$true] %s30_s21 }
   0x5   :  { %s279_s24 = scalar_lea.hbm %s486_s0, 128 }
   0x6   :  { %p280_p0 = scmp.ne.s32.totalorder %s486_s0, %s279_s24  ;;  %p283_p1 = scmp.lt.u32.totalorder %s279_s24, %s486_s0 }
   0x8   :  { %p285_p2 = pnand %p283_p1, %p280_p0 }
   0xa   :  { %288 = shalt.err (!%p285_p2)
}
   0xb   :  { %s289_s29 = scalar_lea.vmem %s22_s19, 128  ;;  %p294_p4 = scmp.lt.s32.totalorder %s22_s19, %s22_s19 }
   0xc   :  { %p290_p3 = scmp.ne.s32.totalorder %s22_s19, %s289_s29  ;;  %p295_p5 = scmp.lt.s32.totalorder %s289_s29, %s289_s29 }
   0xe   :  { %p296_p6 = por %p295_p5, %p294_p4 }
  0x10   :  { %p297_p7 = pnand %p296_p6, %p290_p3 }
  0x12   :  { %300 = shalt.err (!%p297_p7)
}
  0x13   :  { %24 = dma.hbm_to_vmem [thread:$0]  %s486_s0, 128, %s22_s19, [#allocation3]  }
  0x14   :  { %s301_s9 = scalar_lea.hbm %s487_s1, 512 }
  0x15   :  { %p302_p8 = scmp.ne.s32.totalorder %s487_s1, %s301_s9  ;;  %p305_p9 = scmp.lt.u32.totalorder %s301_s9, %s487_s1 }
  0x17   :  { %p307_p10 = pnand %p305_p9, %p302_p8 }
  0x19   :  { %310 = shalt.err (!%p307_p10)
}
  0x1a   :  { %s311_s14 = scalar_lea.vmem %s414_s21, 512  ;;  %p316_p12 = scmp.lt.s32.totalorder %s414_s21, %s414_s21 }
  0x1b   :  { %p312_p11 = scmp.ne.s32.totalorder %s414_s21, %s311_s14  ;;  %p317_p13 = scmp.lt.s32.totalorder %s311_s14, %s311_s14 }
  0x1d   :  { %p318_p0 = por %p317_p13, %p316_p12 }
  0x1f   :  { %p319_p1 = pnand %p318_p0, %p312_p11 }
  0x21   :  { %322 = shalt.err (!%p319_p1)
}
  0x22   :  { %s377_s0 = smov 128   ;;  %s378_s15 = smov 8  }
  0x23   :  { %36 = dma.hbm_to_vmem [thread:$0]  %s487_s1, 512, %s414_s21, [#allocation6], %s377_s0, %s377_s0, %s378_s15  }
  0x24   :  { %367 = dma.done.wait [#allocation3], 128  }
  0x25   :  { %368 = vsyncadd [#allocation3], 4294967168 }
  0x26   :  { %369 = dma.done.wait [#allocation6], 512  }
  0x27   :  { %370 = vsyncadd [#allocation6], 4294966784  ;;  %v379_v0 = vmov 0.0|0.0   ;;  %vm380_vm0 = vmmov 0   ;;  %v381_v1 = vmov 0.0   ;;  %v48_v2 = vld [vmem:[#allocation5] sm:$0xff] }
  0x28   :  { %260 = vmatprep.subr.bf16.mxu0 %v379_v0  ;;  %257 = vmatprep.mubr.msk.f32.mxu0 %vm380_vm0, %v381_v1  ;;  %v49_v3 = vld [vmem:[#allocation5 + $0x8] sm:$0xff]  ;;  %v50_v4 = vld [vmem:[#allocation5 + $0x10] sm:$0xff]  ;;  %v51_v6 = vld [vmem:[#allocation5 + $0x18] sm:$0xff]  ;;  %vm55_vm1 = vcmask 261120   ;;  %s382_s21 = smov [#allocation7]  }
  0x29   :  { %v261_v5 = vpack.c.bf16 %v49_v3, %v48_v2  ;;  %v47_v7 = vld [vmem:[#allocation2] sm:$0xff]  ;;  %v264_v9 = vpack.c.bf16 %v51_v6, %v50_v4  ;;  %s212_s22 = sshll.u32 %s382_s21, 4  ;;  %s213_s22 = int_to_ptr.vmem [resolvable:$true] %s212_s22 }
  0x2a   :  { %v54_v8 = vmul.f32 %v47_v7, %v47_v7  ;;  %v237_v16 = vld [vmem:[%s489_s3] ss:$0 sm:$0xff]  ;;  %s323_s3 = scalar_lea.vmem %s213_s22, 128  ;;  %p328_p3 = scmp.lt.s32.totalorder %s213_s22, %s213_s22 }
  0x2b   :  { %262 = vmatpush3.bf16.msra.mxu0 %v261_v5  ;;  %v238_v21 = vld [vmem:[%s488_s2] ss:$0 sm:$0xff]  ;;  %p324_p2 = scmp.ne.s32.totalorder %s213_s22, %s323_s3  ;;  %p329_p4 = scmp.lt.s32.totalorder %s323_s3, %s323_s3 }
  0x2c   :  { %263 = vmatprep.subr.bf16.mxu0 %v379_v0  ;;  %v56_v10 = vsel %vm55_vm1, %v54_v8, 0.0 }
  0x2d   :  { %57 = vadd.xlane.f32.xlu0 %v56_v10  ;;  %p330_p5 = por %p329_p4, %p328_p3 }
  0x2f   :  { %265 = vmatpush3.bf16.msra.mxu0 %v264_v9  ;;  %p331_p6 = pnand %p330_p5, %p324_p2 }
  0x32   :  { %258 = vmatmul.mubr.msk.f32.vlgmr.msra.gmra.mrb[0].mxu0 %vm55_vm1, %v47_v7 }
  0xba   :  { %v58_v11 = vpop.xlane.xlu0 %57 }
  0xbb   :  { %275 = vrsqrt.f32 %v58_v11  ;;  %vm61_vm2 = vcmp.eq.f32.partialorder %v58_v11, inf  ;;  %v64_v14 = vand.u32 2147483648, %v58_v11  ;;  %vm63_vm3 = vcmp.eq.f32.partialorder %v58_v11, 0.0 }
  0xc5   :  { %v276_v12 = vpop.eup %275 }
  0xc6   :  { %v60_v13 = vmul.f32 %v276_v12, %v58_v11 }
  0xc8   :  { %v62_v15 = vsel %vm61_vm2, %v58_v11, %v60_v13 }
  0xc9   :  { %v449_v17 = vsel %vm63_vm3, %v64_v14, %v62_v15 }
  0xca   :  { %v145_v18 = vmul.f32 %v237_v16, %v449_v17 }
  0xcc   :  { %v146_v19 = vmax.f32 %v145_v18, 1e-08 }
  0xce   :  { %277 = vrcp.f32 %v146_v19 }
  0xd8   :  { %v278_v20 = vpop.eup %277 }
  0xd9   :  { %v154_v22 = vmul.f32 %v278_v20, %v238_v21 }
 0x105   :  { %v135_v23 = vpop.f32.mrb[0].mxu0 }
 0x106   :  { %v155_v24 = vmul.f32 %v154_v22, %v135_v23  ;;  %v259_v25 = vpop.f32.mrb[1].mxu0 }
 0x108   :  { %v239_v26 = vclamps-f32 %v155_v24, 1.0 }
 0x10a   :  { %v202_v27 = vmul.f32 %v239_v26, %v449_v17  ;;  %vm165_vm4 = vcmp.le.f32.partialorder %v239_v26, 0.70710677  ;;  %vm169_vm5 = vcmp.le.f32.partialorder %v239_v26, 6.123234e-17  ;;  %vm173_vm6 = vcmp.le.f32.partialorder %v239_v26, -0.70710677 }
 0x10b   :  { %v240_v28 = vsel %vm165_vm4, 1.0, %v381_v1  ;;  %v241_v29 = vsel %vm169_vm5, 1.0, %v381_v1 }
 0x10c   :  { %203 = vst [vmem:[#allocation7] sm:$0xff] %v202_v27 }
 0x10d   :  { %334 = shalt.err (!%p331_p6)
}
 0x10e   :  { %s335_s24 = scalar_lea.hbm %s490_s4, 128 }
 0x10f   :  { %p336_p7 = scmp.ne.s32.totalorder %s490_s4, %s335_s24  ;;  %p339_p8 = scmp.lt.u32.totalorder %s335_s24, %s490_s4 }
 0x111   :  { %p341_p9 = pnand %p339_p8, %p336_p7 }
 0x113   :  { %344 = shalt.err (!%p341_p9)
}
 0x114   :  { %215 = dma.vmem_to_hbm [thread:$0]  %s213_s22, 128, %s490_s4, [#allocation4]   ;;  %v172_v30 = vadd.f32 %v241_v29, %v240_v28  ;;  %vm177_vm7 = vcmp.le.f32.partialorder %v239_v26, -1.0  ;;  %v242_v31 = vsel %vm173_vm6, 1.0, %v381_v1  ;;  %v158_v38 = vmul.f32 %v239_v26, %v239_v26 }
 0x115   :  { %v243_v33 = vsel %vm177_vm7, 1.0, %v381_v1  ;;  %v161_v42 = vmul.f32 8.0, %v239_v26  ;;  %s383_s4 = smov [#allocation8]  }
 0x116   :  { %v176_v32 = vadd.f32 %v242_v31, %v172_v30  ;;  %v159_v41 = vmul.f32 %v158_v38, %v158_v38  ;;  %s222_s6 = sshll.u32 %s383_s4, 4  ;;  %s223_s6 = int_to_ptr.vmem [resolvable:$true] %s222_s6 }
 0x117   :  { %v162_v48 = vmul.f32 %v239_v26, %v161_v42  ;;  %s345_s7 = scalar_lea.vmem %s223_s6, 128  ;;  %p350_p11 = scmp.lt.s32.totalorder %s223_s6, %s223_s6 }
 0x118   :  { %v180_v34 = vadd.f32 %v243_v33, %v176_v32  ;;  %v160_v46 = vmul.f32 8.0, %v159_v41  ;;  %p346_p10 = scmp.ne.s32.totalorder %s223_s6, %s345_s7  ;;  %p351_p12 = scmp.lt.s32.totalorder %s345_s7, %s345_s7 }
 0x11a   :  { %v181_v35 = vand.u32 2147483647, %v180_v34  ;;  %v190_v45 = vand.u32 2147483648, %v180_v34  ;;  %v163_v50 = vsub.f32 %v160_v46, %v162_v48  ;;  %v200_v56 = vmul.f32 2.0, %v180_v34  ;;  %p352_p13 = por %p351_p12, %p350_p11 }
 0x11c   :  { %v183_v36 = vmul.f32 0.5, %v181_v35  ;;  %v164_v53 = vadd.f32 1.0, %v163_v50  ;;  %p353_p0 = pnand %p352_p13, %p346_p10 }
 0x11e   :  { %v184_v37 = vfloor.f32 %v183_v36 }
 0x120   :  { %v185_v39 = vmul.f32 2.0, %v184_v37 }
 0x122   :  { %v186_v40 = vsub.f32 %v181_v35, %v185_v39 }
 0x124   :  { %vm187_vm8 = vcmp.eq.f32.partialorder %v186_v40, 2.0 }
 0x125   :  { %v188_v43 = vsel %vm187_vm8, 0.0, %v186_v40 }
 0x126   :  { %v189_v44 = vand.u32 2147483647, %v188_v43 }
 0x128   :  { %v191_v47 = vor.u32 %v190_v45, %v189_v44 }
 0x12a   :  { %vm192_vm9 = vcmp.ne.f32.partialorder %v191_v47, 0.0  ;;  %vm193_vm10 = vcmp.lt.f32.partialorder %v191_v47, 0.0  ;;  %v195_v49 = vadd.f32 2.0, %v191_v47 }
 0x12b   :  { %vm194_vm11 = vmand %vm193_vm10, %vm192_vm9 }
 0x12c   :  { %v196_v51 = vsel %vm194_vm11, %v195_v49, %v191_v47 }
 0x12d   :  { %v197_v52 = vmul.f32 2.0, %v196_v51 }
 0x12f   :  { %v198_v54 = vsub.f32 1.0, %v197_v52 }
 0x131   :  { %v199_v55 = vmul.f32 %v198_v54, %v164_v53 }
 0x133   :  { %v201_v57 = vsub.f32 %v199_v55, %v200_v56 }
 0x135   :  { %v204_v58 = vmul.f32 %v201_v57, %v449_v17 }
 0x137   :  { %205 = vst [vmem:[#allocation8] sm:$0xff] %v204_v58 }
 0x138   :  { %356 = shalt.err (!%p353_p0)
}
 0x139   :  { %s357_s10 = scalar_lea.hbm %s491_s5, 128 }
 0x13a   :  { %p358_p1 = scmp.ne.s32.totalorder %s491_s5, %s357_s10  ;;  %p361_p2 = scmp.lt.u32.totalorder %s357_s10, %s491_s5 }
 0x13c   :  { %p363_p3 = pnand %p361_p2, %p358_p1 }
 0x13e   :  { %366 = shalt.err (!%p363_p3)
}
 0x13f   :  { %225 = dma.vmem_to_hbm [thread:$0]  %s223_s6, 128, %s491_s5, [#allocation9]  }
 0x140   :  { %371 = dma.done.wait [#allocation4], 128  }
 0x141   :  { %372 = vsyncadd [#allocation4], 4294967168 }
 0x142   :  { %373 = dma.done.wait [#allocation9], 128  }
 0x143   :  { %374 = vsyncadd [#allocation9], 4294967168 }
 0x144   :  { %232 = vsyncpa [#allocation3], 1 }
 0x145   :  { %233 = vsyncpa [#allocation6], 1 }
 0x146   :  { %234 = vsyncpa [#allocation4], 1 }
 0x147   :  { %235 = vsyncpa [#allocation9], 1 }

</bundles_post_ra>
